<compile_context>
chip_gen: v5e
topology: v5e:2x2
jax: 0.10.0
libtpu: 0.0.40
codegen_flags: <defaults>
</compile_context>

<pallas_src>
import math
import jax
import jax.numpy as jnp
from jax import lax
from jax.experimental import pallas as pl
from jax.experimental.pallas import tpu as pltpu

LAYER_NORM_EPS = 1e-12          # BERT default config.layer_norm_eps
_INV_SQRT2 = 1.0 / math.sqrt(2.0)


def _gelu_erf(x):
    # Original BERT gelu: x * 0.5 * (1 + erf(x / sqrt(2)))
    return 0.5 * x * (1.0 + lax.erf(x * _INV_SQRT2))


def _round_up(a, b):
    return (a + b - 1) // b * b


def mlm_head_kernel(x_ref, w1_ref, b1_ref, gamma_ref, beta_ref,
                    wdec_ref, dbias_ref, out_ref, h_scratch):
    # ---- Stage 1: BertPredictionHeadTransform, once per token tile -----------------
    # Correct only because the vocab axis (program_id(1)) is the innermost grid axis.
    @pl.when(pl.program_id(1) == 0)
    def _():
        # x: (tn, H) bf16, w1: (H_out, H_in) bf16 (torch layout) -> contract both on
        # their last dim; accumulate in f32 on the MXU.
        h = lax.dot_general(
            x_ref[...], w1_ref[...],
            dimension_numbers=(((1,), (1,)), ((), ())),
            preferred_element_type=jnp.float32)
        h = h + b1_ref[...]
        h = _gelu_erf(h)
        # LayerNorm over hidden dim (f32)
        mean = jnp.mean(h, axis=-1, keepdims=True)
        centered = h - mean
        var = jnp.mean(centered * centered, axis=-1, keepdims=True)
        h = centered * lax.rsqrt(var + LAYER_NORM_EPS)
        h = h * gamma_ref[...] + beta_ref[...]
        h_scratch[...] = h.astype(h_scratch.dtype)      # bf16 scratch for stage 2

    # ---- Stage 2: decoder matmul for this (token tile, vocab tile) -----------------
    # h: (tn, H) bf16, wdec: (tv, H) bf16 (torch layout) -> (tn, tv) f32
    scores = lax.dot_general(
        h_scratch[...], wdec_ref[...],
        dimension_numbers=(((1,), (1,)), ((), ())),
        preferred_element_type=jnp.float32)
    scores = scores + dbias_ref[...]
    out_ref[...] = scores.astype(out_ref.dtype)


def bert_only_mlm_head(sequence_output,
                       w_transform, b_transform, gamma, beta,
                       w_decoder, decoder_bias,
                       *, tn=512, tv=1024,
                       compute_dtype=jnp.bfloat16, out_dtype=jnp.float32):
    """sequence_output: (B, S, H).
    w_transform: (H, H) torch Linear weight (out, in); b_transform: (H,)
    gamma/beta: (H,) LayerNorm params.
    w_decoder: (V, H) torch Linear weight (out, in); decoder_bias: (V,)
    Returns prediction scores (B, S, V) in out_dtype (default f32)."""
    B, S, H = sequence_output.shape
    V = w_decoder.shape[0]
    N = B * S

    # bf16 operands for the MXU; biases / LN params / decoder bias stay f32.
    x = sequence_output.reshape(N, H).astype(compute_dtype)
    w1 = w_transform.astype(compute_dtype)                  # (H_out, H_in) - no transpose
    wdec = w_decoder.astype(compute_dtype)                  # (V, H)        - no transpose
    b1 = b_transform.reshape(1, H).astype(jnp.float32)
    g2 = gamma.reshape(1, H).astype(jnp.float32)
    bta = beta.reshape(1, H).astype(jnp.float32)
    dbias = decoder_bias.reshape(1, V).astype(jnp.float32)

    # ---- tile sizes + padding so the grid always divides evenly --------------------
    tn_eff = min(tn, _round_up(N, 8))          # sublane multiple of 8
    Np = _round_up(N, tn_eff)
    tv_eff = min(tv, _round_up(V, 128))        # lane-dense multiple of 128
    Vp = _round_up(V, tv_eff)

    if Np != N:
        x = jnp.pad(x, ((0, Np - N), (0, 0)))
    if Vp != V:
        wdec = jnp.pad(wdec, ((0, Vp - V), (0, 0)))
        dbias = jnp.pad(dbias, ((0, 0), (0, Vp - V)))

    grid = (Np // tn_eff, Vp // tv_eff)

    # ---- VMEM budget -> explicit scoped limit (double-buffered tiles + scratch) ----
    cbytes = jnp.dtype(compute_dtype).itemsize
    obytes = jnp.dtype(out_dtype).itemsize
    vmem_est = 2 * (tn_eff * H * cbytes        # x tile
                    + H * H * cbytes           # w_transform
                    + tv_eff * H * cbytes      # decoder weight tile
                    + tn_eff * tv_eff * obytes  # output tile
                    + (3 * H + tv_eff) * 4)    # biases / LN params
    vmem_est += tn_eff * H * cbytes            # h_scratch
    vmem_limit = int(min(64 * 1024 * 1024, max(32 * 1024 * 1024, 2 * vmem_est)))

    out = pl.pallas_call(
        mlm_head_kernel,
        out_shape=jax.ShapeDtypeStruct((Np, Vp), out_dtype),
        grid_spec=pltpu.PrefetchScalarGridSpec(
            num_scalar_prefetch=0,
            grid=grid,
            in_specs=[
                pl.BlockSpec((tn_eff, H), lambda i, j: (i, 0)),   # x tile (bf16)
                pl.BlockSpec((H, H), lambda i, j: (0, 0)),        # transform weight (bf16)
                pl.BlockSpec((1, H), lambda i, j: (0, 0)),        # transform bias (f32)
                pl.BlockSpec((1, H), lambda i, j: (0, 0)),        # LN gamma (f32)
                pl.BlockSpec((1, H), lambda i, j: (0, 0)),        # LN beta (f32)
                pl.BlockSpec((tv_eff, H), lambda i, j: (j, 0)),   # decoder weight tile (bf16)
                pl.BlockSpec((1, tv_eff), lambda i, j: (0, j)),   # decoder bias tile (f32)
            ],
            out_specs=pl.BlockSpec((tn_eff, tv_eff), lambda i, j: (i, j)),
            scratch_shapes=[pltpu.VMEM((tn_eff, H), compute_dtype)],
        ),
        compiler_params=pltpu.CompilerParams(
            dimension_semantics=("parallel", "arbitrary"),
            vmem_limit_bytes=vmem_limit),
    )(x, w1, b1, g2, bta, wdec, dbias)

    return out[:N, :V].reshape(B, S, V)


def reference_mlm_head(sequence_output, w_transform, b_transform, gamma, beta,
                       w_decoder, decoder_bias):
    h = jnp.einsum('bsh,oh->bso', sequence_output, w_transform) + b_transform
    h = 0.5 * h * (1.0 + lax.erf(h / jnp.sqrt(2.0)))
    mean = jnp.mean(h, axis=-1, keepdims=True)
    var = jnp.mean((h - mean) ** 2, axis=-1, keepdims=True)
    h = (h - mean) / jnp.sqrt(var + LAYER_NORM_EPS)
    h = h * gamma + beta
    return jnp.einsum('bsh,vh->bsv', h, w_decoder) + decoder_bias


if __name__ == "__main__":
    # Small synthetic config consistent with BertOnlyMLMHead
    batch, seq = 2, 8
    hidden_size = 32
    vocab_size = 128

    key = jax.random.PRNGKey(0)
    k_x, k_w1, k_b1, k_wd = jax.random.split(key, 4)

    sequence_output = jax.random.normal(k_x, (batch, seq, hidden_size), jnp.float32)
    w_transform = 0.02 * jax.random.normal(k_w1, (hidden_size, hidden_size), jnp.float32)
    b_transform = 0.02 * jax.random.normal(k_b1, (hidden_size,), jnp.float32)
    gamma = jnp.ones((hidden_size,), jnp.float32)
    beta = jnp.zeros((hidden_size,), jnp.float32)
    w_decoder = 0.02 * jax.random.normal(k_wd, (vocab_size, hidden_size), jnp.float32)
    decoder_bias = jnp.zeros((vocab_size,), jnp.float32)   # nn.Parameter(torch.zeros(V))

    out = bert_only_mlm_head(sequence_output,
                             w_transform, b_transform, gamma, beta,
                             w_decoder, decoder_bias)
    out = jax.block_until_ready(out)

    ref = reference_mlm_head(sequence_output, w_transform, b_transform, gamma, beta,
                             w_decoder, decoder_bias)
    assert out.shape == (batch, seq, vocab_size)
    # bf16 matmul operands with f32 accumulation -> loose tolerance vs f32 reference.
    assert jnp.allclose(out, ref, atol=2e-2, rtol=2e-2), "mismatch vs JAX reference"

    print("KERNEL_OK")
</pallas_src>

<mosaic_0001>
module attributes {stable_mosaic.version = 11 : i64} {
  func.func @mlm_head_kernel(%arg0: i32, %arg1: i32, %arg2: memref<16x32xbf16, #tpu.memory_space<vmem>>, %arg3: memref<32x32xbf16, #tpu.memory_space<vmem>>, %arg4: memref<1x32xf32, #tpu.memory_space<vmem>>, %arg5: memref<1x32xf32, #tpu.memory_space<vmem>>, %arg6: memref<1x32xf32, #tpu.memory_space<vmem>>, %arg7: memref<128x32xbf16, #tpu.memory_space<vmem>>, %arg8: memref<1x128xf32, #tpu.memory_space<vmem>>, %arg9: memref<16x128xf32, #tpu.memory_space<vmem>>, %arg10: memref<16x32xbf16, #tpu.memory_space<vmem>>) attributes {dimension_semantics = [#tpu.dimension_semantics<parallel>, #tpu.dimension_semantics<arbitrary>], iteration_bounds = array<i64: 1, 1>, scalar_prefetch = 0 : i64, scratch_operands = 1 : i64, tpu.core_type = #tpu.core_type<tc>, window_params = [{transform_indices = @transform_0, window_bounds = array<i64: 16, 32>}, {pipeline_mode = #tpu.pipeline_mode<synchronous>, transform_indices = @transform_1, window_bounds = array<i64: 32, 32>}, {pipeline_mode = #tpu.pipeline_mode<synchronous>, transform_indices = @transform_2, window_bounds = array<i64: 1, 32>}, {pipeline_mode = #tpu.pipeline_mode<synchronous>, transform_indices = @transform_3, window_bounds = array<i64: 1, 32>}, {pipeline_mode = #tpu.pipeline_mode<synchronous>, transform_indices = @transform_4, window_bounds = array<i64: 1, 32>}, {transform_indices = @transform_5, window_bounds = array<i64: 128, 32>}, {transform_indices = @transform_6, window_bounds = array<i64: 1, 128>}, {transform_indices = @transform_7, window_bounds = array<i64: 16, 128>}]} {
    %c0_i32 = arith.constant 0 : i32
    %0 = arith.cmpi eq, %arg1, %c0_i32 : i32
    %1 = arith.extui %0 : i1 to i32
    %c0_i32_0 = arith.constant 0 : i32
    %2 = arith.cmpi ne, %1, %c0_i32_0 : i32
    scf.if %2 {
      %c0_8 = arith.constant 0 : index
      %c0_9 = arith.constant 0 : index
      %10 = vector.load %arg2[%c0_8, %c0_9] : memref<16x32xbf16, #tpu.memory_space<vmem>>, vector<16x32xbf16>
      %c0_10 = arith.constant 0 : index
      %c0_11 = arith.constant 0 : index
      %11 = vector.load %arg3[%c0_10, %c0_11] : memref<32x32xbf16, #tpu.memory_space<vmem>>, vector<32x32xbf16>
      %cst_12 = arith.constant dense<0.000000e+00> : vector<16x32xf32>
      %12 = tpu.matmul %10, %11, %cst_12 {dimension_numbers = #tpu.dot_dimension_numbers<[1], [1], [0], [0], [0, 0, 1, 0], [], []>} : vector<16x32xbf16>, vector<32x32xbf16>, vector<16x32xf32> -> vector<16x32xf32>
      %c0_13 = arith.constant 0 : index
      %c0_14 = arith.constant 0 : index
      %13 = vector.load %arg4[%c0_13, %c0_14] : memref<1x32xf32, #tpu.memory_space<vmem>>, vector<1x32xf32>
      %14 = vector.broadcast %13 : vector<1x32xf32> to vector<16x32xf32>
      %15 = arith.addf %12, %14 : vector<16x32xf32>
      %cst_15 = arith.constant 5.000000e-01 : f32
      %16 = vector.broadcast %cst_15 : f32 to vector<16x32xf32>
      %17 = arith.mulf %16, %15 : vector<16x32xf32>
      %cst_16 = arith.constant 0.707106769 : f32
      %18 = vector.broadcast %cst_16 : f32 to vector<16x32xf32>
      %19 = arith.mulf %15, %18 : vector<16x32xf32>
      %20 = math.erf %19 : vector<16x32xf32>
      %cst_17 = arith.constant 1.000000e+00 : f32
      %21 = vector.broadcast %cst_17 : f32 to vector<16x32xf32>
      %22 = arith.addf %21, %20 : vector<16x32xf32>
      %23 = arith.mulf %17, %22 : vector<16x32xf32>
      %cst_18 = arith.constant dense<0.000000e+00> : vector<16xf32>
      %24 = vector.multi_reduction <add>, %23, %cst_18 [1] : vector<16x32xf32> to vector<16xf32>
      %25 = vector.shape_cast %24 : vector<16xf32> to vector<16x1xf32>
      %cst_19 = arith.constant 3.200000e+01 : f32
      %26 = vector.broadcast %cst_19 : f32 to vector<16x1xf32>
      %27 = arith.divf %25, %26 : vector<16x1xf32>
      %28 = vector.broadcast %27 : vector<16x1xf32> to vector<16x32xf32>
      %29 = arith.subf %23, %28 : vector<16x32xf32>
      %30 = arith.mulf %29, %29 : vector<16x32xf32>
      %cst_20 = arith.constant dense<0.000000e+00> : vector<16xf32>
      %31 = vector.multi_reduction <add>, %30, %cst_20 [1] : vector<16x32xf32> to vector<16xf32>
      %32 = vector.shape_cast %31 : vector<16xf32> to vector<16x1xf32>
      %cst_21 = arith.constant 3.200000e+01 : f32
      %33 = vector.broadcast %cst_21 : f32 to vector<16x1xf32>
      %34 = arith.divf %32, %33 : vector<16x1xf32>
      %cst_22 = arith.constant 9.99999996E-13 : f32
      %35 = vector.broadcast %cst_22 : f32 to vector<16x1xf32>
      %36 = arith.addf %34, %35 : vector<16x1xf32>
      %37 = math.rsqrt %36 : vector<16x1xf32>
      %38 = vector.broadcast %37 : vector<16x1xf32> to vector<16x32xf32>
      %39 = arith.mulf %29, %38 : vector<16x32xf32>
      %c0_23 = arith.constant 0 : index
      %c0_24 = arith.constant 0 : index
      %40 = vector.load %arg5[%c0_23, %c0_24] : memref<1x32xf32, #tpu.memory_space<vmem>>, vector<1x32xf32>
      %41 = vector.broadcast %40 : vector<1x32xf32> to vector<16x32xf32>
      %42 = arith.mulf %39, %41 : vector<16x32xf32>
      %c0_25 = arith.constant 0 : index
      %c0_26 = arith.constant 0 : index
      %43 = vector.load %arg6[%c0_25, %c0_26] : memref<1x32xf32, #tpu.memory_space<vmem>>, vector<1x32xf32>
      %44 = vector.broadcast %43 : vector<1x32xf32> to vector<16x32xf32>
      %45 = arith.addf %42, %44 : vector<16x32xf32>
      %46 = arith.truncf %45 : vector<16x32xf32> to vector<16x32xbf16>
      %c0_27 = arith.constant 0 : index
      %c0_28 = arith.constant 0 : index
      %47 = vector.load %arg10[%c0_27, %c0_28] : memref<16x32xbf16, #tpu.memory_space<vmem>>, vector<16x32xbf16>
      tpu.vector_store %arg10[%c0_27, %c0_28], %46 {strides = array<i32>} : memref<16x32xbf16, #tpu.memory_space<vmem>>, vector<16x32xbf16>,
    } else {
    }
    %c0 = arith.constant 0 : index
    %c0_1 = arith.constant 0 : index
    %3 = vector.load %arg10[%c0, %c0_1] : memref<16x32xbf16, #tpu.memory_space<vmem>>, vector<16x32xbf16>
    %c0_2 = arith.constant 0 : index
    %c0_3 = arith.constant 0 : index
    %4 = vector.load %arg7[%c0_2, %c0_3] : memref<128x32xbf16, #tpu.memory_space<vmem>>, vector<128x32xbf16>
    %cst = arith.constant dense<0.000000e+00> : vector<16x128xf32>
    %5 = tpu.matmul %3, %4, %cst {dimension_numbers = #tpu.dot_dimension_numbers<[1], [1], [0], [0], [0, 0, 1, 0], [], []>} : vector<16x32xbf16>, vector<128x32xbf16>, vector<16x128xf32> -> vector<16x128xf32>
    %c0_4 = arith.constant 0 : index
    %c0_5 = arith.constant 0 : index
    %6 = vector.load %arg8[%c0_4, %c0_5] : memref<1x128xf32, #tpu.memory_space<vmem>>, vector<1x128xf32>
    %7 = vector.broadcast %6 : vector<1x128xf32> to vector<16x128xf32>
    %8 = arith.addf %5, %7 : vector<16x128xf32>
    %c0_6 = arith.constant 0 : index
    %c0_7 = arith.constant 0 : index
    %9 = vector.load %arg9[%c0_6, %c0_7] : memref<16x128xf32, #tpu.memory_space<vmem>>, vector<16x128xf32>
    tpu.vector_store %arg9[%c0_6, %c0_7], %8 {strides = array<i32>} : memref<16x128xf32, #tpu.memory_space<vmem>>, vector<16x128xf32>,
    return
  }
  func.func @transform_0(%arg0: i32, %arg1: i32) -> (i32, i32) {
    %c0_i32 = arith.constant 0 : i32
    %c0_i32_0 = arith.constant 0 : i32
    return %arg0, %c0_i32 : i32, i32
  }
  func.func @transform_1(%arg0: i32, %arg1: i32) -> (i32, i32) {
    %c0_i32 = arith.constant 0 : i32
    %c0_i32_0 = arith.constant 0 : i32
    %c0_i32_1 = arith.constant 0 : i32
    return %c0_i32, %c0_i32_0 : i32, i32
  }
  func.func @transform_2(%arg0: i32, %arg1: i32) -> (i32, i32) {
    %c0_i32 = arith.constant 0 : i32
    %c0_i32_0 = arith.constant 0 : i32
    %c0_i32_1 = arith.constant 0 : i32
    return %c0_i32, %c0_i32_0 : i32, i32
  }
  func.func @transform_3(%arg0: i32, %arg1: i32) -> (i32, i32) {
    %c0_i32 = arith.constant 0 : i32
    %c0_i32_0 = arith.constant 0 : i32
    %c0_i32_1 = arith.constant 0 : i32
    return %c0_i32, %c0_i32_0 : i32, i32
  }
  func.func @transform_4(%arg0: i32, %arg1: i32) -> (i32, i32) {
    %c0_i32 = arith.constant 0 : i32
    %c0_i32_0 = arith.constant 0 : i32
    %c0_i32_1 = arith.constant 0 : i32
    return %c0_i32, %c0_i32_0 : i32, i32
  }
  func.func @transform_5(%arg0: i32, %arg1: i32) -> (i32, i32) {
    %c0_i32 = arith.constant 0 : i32
    %c0_i32_0 = arith.constant 0 : i32
    return %arg1, %c0_i32 : i32, i32
  }
  func.func @transform_6(%arg0: i32, %arg1: i32) -> (i32, i32) {
    %c0_i32 = arith.constant 0 : i32
    %c0_i32_0 = arith.constant 0 : i32
    return %c0_i32, %arg1 : i32, i32
  }
  func.func @transform_7(%arg0: i32, %arg1: i32) -> (i32, i32) {
    %c0_i32 = arith.constant 0 : i32
    return %arg0, %arg1 : i32, i32
  }
}

</mosaic_0001>

<bundles_post_ra>
// kernel: tpu_custom_call.1
= control target key start
LH: loop header
LB: loop body
LE: loop exit
PB: predicated region body
PF: predicated region fallthrough
CT: control target
= control target key end

     0   :  { %vm57_vm0 = vcmask 261120   ;;  %s595_s0 = inlined_call_operand.vmem [shape: bf16[16,32], index: 0, kind: input, shape index: {}]   ;;  %s596_s1 = inlined_call_operand.vmem [shape: bf16[32,32], index: 1, kind: input, shape index: {}]   ;;  %s597_s2 = inlined_call_operand.vmem [shape: f32[1,32], index: 2, kind: input, shape index: {}]   ;;  %s598_s3 = inlined_call_operand.vmem [shape: f32[1,32], index: 3, kind: input, shape index: {}]   ;;  %s599_s4 = inlined_call_operand.vmem [shape: f32[1,32], index: 4, kind: input, shape index: {}]   ;;  %s600_s5 = inlined_call_operand.vmem [shape: bf16[128,32], index: 5, kind: input, shape index: {}]   ;;  %s601_s6 = inlined_call_operand.vmem [shape: f32[1,128], index: 6, kind: input, shape index: {}]   ;;  %s602_s7 = inlined_call_operand.hbm [shape: f32[16,128], index: 7, kind: output, shape index: {}]  }
   0x1   :  { %v420_v0 = vld [vmem:[%s596_s1 + $0x8] sm:$0xff] }
   0x2   :  { %v65_v1 = vsel %vm57_vm0, %v420_v0, 0 }
   0x3   :  { %73 = vmatpush.bf16.xpose.msra.mxu0 %v65_v1 }
   0x4   :  { %12 = vsyncpa [#allocation4], 0  ;;  %v419_v2 = vld [vmem:[%s596_s1] sm:$0xff]  ;;  %vm234_vm14 = vcmask 257024   ;;  %s475_s25 = smov [#allocation3]   ;;  %s354_s29 = sshll.u32 %s602_s7, 4  ;;  %s355_s29 = int_to_ptr.hbm [resolvable:$true] %s354_s29 }
   0x5   :  { %v62_v3 = vsel %vm57_vm0, %v419_v2, 0  ;;  %v418_v4 = vld [vmem:[%s595_s0] sm:$0xff]  ;;  %s352_s26 = sshll.u32 %s475_s25, 4  ;;  %s476_s30 = smov 128   ;;  %s353_s26 = int_to_ptr.vmem [resolvable:$true] %s352_s26 }
   0x6   :  { %v434_v5 = vld [vmem:[%s597_s2] ss:$0 sm:$0xff]  ;;  %s477_s8 = smov 8  }
   0xb   :  { %74 = vmatpush.bf16.xpose.msra.mxu0 %v62_v3 }
  0x12   :  { %378 = vmatmul.msk.bf16.vlgmr.msra.gmra.mxu0 %vm57_vm0, %v418_v4 }
  0x8f   :  { %v76_v6 = vpop.f32.mrf.mxu0 }
  0x90   :  { %v533_v7 = vadd.f32 %v434_v5, %v76_v6 }
  0x92   :  { %v83_v8 = vmul.f32 0.70710677, %v533_v7 }
  0x94   :  { %v85_v9 = vmul.f32 %v83_v8, %v83_v8 }
  0x96   :  { %v86_v10 = vmin.f32 %v85_v9, 16.0 }
  0x97   :  { %v78_v11 = vpop.f32.mrf.mxu0 }
  0x98   :  { %v87_v12 = vmul.f32 2.1237322e-06, %v86_v10  ;;  %v536_v13 = vadd.f32 %v434_v5, %v78_v11  ;;  %v98_v14 = vmul.f32 3.8918573e-05, %v86_v10 }
  0x9a   :  { %v88_v15 = vadd.f32 0.00028619796, %v87_v12  ;;  %v539_v16 = vmul.f32 0.70710677, %v536_v13  ;;  %v99_v17 = vadd.f32 0.001143296, %v98_v14 }
  0x9c   :  { %v89_v18 = vmul.f32 %v88_v15, %v86_v10  ;;  %v125_v19 = vmul.f32 %v539_v16, %v539_v16  ;;  %v100_v20 = vmul.f32 %v99_v17, %v86_v10  ;;  %v81_v15 = vmul.f32 0.5, %v533_v7 }
  0x9e   :  { %v126_v21 = vmin.f32 %v125_v19, 16.0  ;;  %v101_v22 = vadd.f32 0.014752088, %v100_v20  ;;  %v90_v23 = vadd.f32 0.0036580483, %v89_v18 }
  0xa0   :  { %v127_v24 = vmul.f32 2.1237322e-06, %v126_v21  ;;  %v138_v25 = vmul.f32 3.8918573e-05, %v126_v21  ;;  %v102_v26 = vmul.f32 %v101_v22, %v86_v10  ;;  %v91_v30 = vmul.f32 %v90_v23, %v86_v10 }
  0xa2   :  { %v128_v27 = vadd.f32 0.00028619796, %v127_v24  ;;  %v139_v28 = vadd.f32 0.001143296, %v138_v25  ;;  %v103_v29 = vadd.f32 0.112945676, %v102_v26 }
  0xa3   :  { %v92_v37 = vadd.f32 0.05243302, %v91_v30  ;;  %v82_v25 = vmul.f32 0.5, %v536_v13  ;;  %v429_v30 = vld [vmem:[%s600_s5 + $0x38] sm:$0xff]  ;;  %v428_v13 = vld [vmem:[%s600_s5 + $0x30] sm:$0xff] }
  0xa4   :  { %v129_v31 = vmul.f32 %v128_v27, %v126_v21  ;;  %v140_v32 = vmul.f32 %v139_v28, %v126_v21  ;;  %v104_v33 = vmul.f32 %v103_v29, %v86_v10  ;;  %v474_v28 = vmov 32.0  }
  0xa5   :  { %v93_v43 = vmul.f32 %v92_v37, %v86_v10 }
  0xa6   :  { %v141_v34 = vadd.f32 0.014752088, %v140_v32  ;;  %v130_v35 = vadd.f32 0.0036580483, %v129_v31  ;;  %v105_v36 = vadd.f32 0.4994258, %v104_v33 }
  0xa7   :  { %v94_v47 = vadd.f32 0.18741608, %v93_v43  ;;  %v330_v32 = vsel %vm57_vm0, %v429_v30, 0 }
  0xa8   :  { %v142_v38 = vmul.f32 %v141_v34, %v126_v21  ;;  %v106_v39 = vmul.f32 %v105_v36, %v86_v10  ;;  %v131_v41 = vmul.f32 %v130_v35, %v126_v21  ;;  %332 = vmatpush.bf16.xpose.msra.mxu1 %v330_v32  ;;  %v327_v34 = vsel %vm57_vm0, %v428_v13, 0 }
  0xa9   :  { %v95_v52 = vmul.f32 %v94_v47, %v86_v10  ;;  %v427_v47 = vld [vmem:[%s600_s5 + $0x28] sm:$0xff] }
  0xaa   :  { %v143_v40 = vadd.f32 0.112945676, %v142_v38  ;;  %v107_v42 = vadd.f32 1.0, %v106_v39  ;;  %v132_v46 = vadd.f32 0.05243302, %v131_v41 }
  0xab   :  { %v96_v57 = vadd.f32 1.1283791, %v95_v52 }
  0xac   :  { %v144_v44 = vmul.f32 %v143_v40, %v126_v21  ;;  %438 = vrcp.f32 %v107_v42  ;;  %v133_v51 = vmul.f32 %v132_v46, %v126_v21  ;;  %v119_v56 = vand.u32 2147483648, %v107_v42 }
  0xad   :  { %v117_v59 = vand.u32 2147483647, %v107_v42  ;;  %vm113_vm2 = vweird.f32 %v107_v42  ;;  %v97_v1 = vmul.f32 %v96_v57, %v83_v8 }
  0xae   :  { %v145_v45 = vadd.f32 0.4994258, %v144_v44  ;;  %v134_v55 = vadd.f32 0.18741608, %v133_v51  ;;  %v120_v63 = vor.u32 1.1754944e-38, %v119_v56  ;;  %v425_v51 = vld [vmem:[%s600_s5 + $0x18] sm:$0xff] }
  0xaf   :  { %vm118_vm4 = vcmp.eq.f32.partialorder %v117_v59, 8.507059e+37  ;;  %v318_v52 = vsel %vm57_vm0, %v425_v51, 0 }
  0xb0   :  { %v146_v48 = vmul.f32 %v145_v45, %v126_v21  ;;  %v135_v62 = vmul.f32 %v134_v55, %v126_v21  ;;  %333 = vmatpush.bf16.xpose.msra.mxu1 %v327_v34  ;;  %v423_v55 = vld [vmem:[%s600_s5 + $0x8] sm:$0xff] }
  0xb1   :  { %v312_v57 = vsel %vm57_vm0, %v423_v55, 0 }
  0xb2   :  { %v147_v49 = vadd.f32 1.0, %v146_v48  ;;  %v439_v50 = vpop.eup %438  ;;  %v136_v9 = vadd.f32 1.1283791, %v135_v62  ;;  %v324_v48 = vsel %vm57_vm0, %v427_v47, 0 }
  0xb3   :  { %v109_v53 = vmul.f32 %v439_v50, %v107_v42  ;;  %vm114_vm1 = vweird.f32 %v439_v50 }
  0xb4   :  { %440 = vrcp.f32 %v147_v49  ;;  %vm115_vm3 = vmor %vm113_vm2, %vm114_vm1  ;;  %v159_v6 = vand.u32 2147483648, %v147_v49  ;;  %v157_v11 = vand.u32 2147483647, %v147_v49  ;;  %vm153_vm6 = vweird.f32 %v147_v49 }
  0xb5   :  { %v110_v54 = vsub.f32 1.0, %v109_v53  ;;  %v137_v8 = vmul.f32 %v136_v9, %v539_v16  ;;  %442 = vrcp.f32 %v474_v28  ;;  %v424_v53 = vld [vmem:[%s600_s5 + $0x10] sm:$0xff]  ;;  %v437_v28 = vld [vmem:[%s601_s6] ss:$0 sm:$0xff] }
  0xb6   :  { %v160_v18 = vor.u32 1.1754944e-38, %v159_v6  ;;  %vm158_vm8 = vcmp.eq.f32.partialorder %v157_v11, 8.507059e+37  ;;  %v435_v11 = vld [vmem:[%s598_s3] ss:$0 sm:$0xff] }
  0xb7   :  { %v111_v58 = vmul.f32 %v439_v50, %v110_v54  ;;  %v315_v54 = vsel %vm57_vm0, %v424_v53, 0 }
  0xb8   :  { %334 = vmatpush.bf16.xpose.msra.mxu1 %v324_v48 }
  0xb9   :  { %v112_v61 = vadd.f32 %v439_v50, %v111_v58 }
  0xba   :  { %v441_v60 = vpop.eup %440 }
  0xbb   :  { %v149_v0 = vmul.f32 %v441_v60, %v147_v49  ;;  %v116_v2 = vsel %vm115_vm3, %v439_v50, %v112_v61  ;;  %vm154_vm5 = vweird.f32 %v441_v60  ;;  %v443_v29 = vpop.eup %442  ;;  %v426_v49 = vld [vmem:[%s600_s5 + $0x20] sm:$0xff] }
  0xbc   :  { %v121_v3 = vsel %vm118_vm4, %v120_v63, %v116_v2  ;;  %vm155_vm7 = vmor %vm153_vm6, %vm154_vm5  ;;  %v176_v16 = vmul.f32 32.0, %v443_v29  ;;  %vm180_vm9 = vweird.f32 %v443_v29  ;;  %v321_v50 = vsel %vm57_vm0, %v426_v49, 0 }
  0xbd   :  { %v150_v4 = vsub.f32 1.0, %v149_v0  ;;  %v122_v5 = vmul.f32 %v121_v3, %v97_v1 }
  0xbe   :  { %v177_v31 = vsub.f32 1.0, %v176_v16 }
  0xbf   :  { %v151_v10 = vmul.f32 %v441_v60, %v150_v4  ;;  %v379_v12 = vclamps-f32 %v122_v5, 1.0 }
  0xc0   :  { %v178_v33 = vmul.f32 %v443_v29, %v177_v31  ;;  %335 = vmatpush.bf16.xpose.msra.mxu1 %v321_v50 }
  0xc1   :  { %v152_v14 = vadd.f32 %v441_v60, %v151_v10  ;;  %v165_v17 = vadd.f32 1.0, %v379_v12 }
  0xc2   :  { %v179_v35 = vadd.f32 %v443_v29, %v178_v33 }
  0xc3   :  { %v156_v19 = vsel %vm155_vm7, %v441_v60, %v152_v14  ;;  %v167_v20 = vmul.f32 %v165_v17, %v81_v15  ;;  %v422_v60 = vld [vmem:[%s600_s5] sm:$0xff] }
  0xc4   :  { %v161_v21 = vsel %vm158_vm8, %v160_v18, %v156_v19  ;;  %v181_v36 = vsel %vm180_vm9, %v443_v29, %v179_v35  ;;  %v309_v62 = vsel %vm57_vm0, %v422_v60, 0  ;;  %v436_v15 = vld [vmem:[%s599_s4] ss:$0 sm:$0xff] }
  0xc5   :  { %v162_v22 = vmul.f32 %v161_v21, %v137_v8  ;;  %v169_v23 = vsel %vm57_vm0, %v167_v20, 0.0 }
  0xc6   :  { %170 = vadd.xlane.f32.xlu0 %v169_v23 }
  0xc7   :  { %v380_v24 = vclamps-f32 %v162_v22, 1.0 }
  0xc8   :  { %336 = vmatpush.bf16.xpose.msra.mxu1 %v318_v52 }
  0xc9   :  { %v166_v26 = vadd.f32 1.0, %v380_v24 }
  0xcb   :  { %v168_v27 = vmul.f32 %v166_v26, %v82_v25 }
  0xcd   :  { %v172_v7 = vsel %vm57_vm0, %v168_v27, 0.0 }
  0xce   :  { %173 = vadd.xlane.f32.xlu0 %v172_v7 }
  0xd0   :  { %337 = vmatpush.bf16.xpose.msra.mxu1 %v315_v54 }
  0xd8   :  { %338 = vmatpush.bf16.xpose.msra.mxu1 %v312_v57 }
  0xe0   :  { %339 = vmatpush.bf16.xpose.msra.mxu1 %v309_v62 }
 0x139   :  { %v171_v37 = vpop.xlane.xlu0 %170 }
 0x13a   :  { %v182_v38 = vmul.f32 %v181_v36, %v171_v37 }
 0x13c   :  { %v184_v39 = vsub.f32 %v167_v20, %v182_v38 }
 0x13e   :  { %v186_v40 = vmul.f32 %v184_v39, %v184_v39 }
 0x140   :  { %v188_v41 = vsel %vm57_vm0, %v186_v40, 0.0 }
 0x141   :  { %189 = vadd.xlane.f32.xlu1 %v188_v41  ;;  %v174_v42 = vpop.xlane.xlu0 %173 }
 0x142   :  { %v183_v43 = vmul.f32 %v181_v36, %v174_v42 }
 0x144   :  { %v185_v44 = vsub.f32 %v168_v27, %v183_v43 }
 0x146   :  { %v187_v45 = vmul.f32 %v185_v44, %v185_v44 }
 0x148   :  { %v191_v46 = vsel %vm57_vm0, %v187_v45, 0.0 }
 0x149   :  { %192 = vadd.xlane.f32.xlu1 %v191_v46 }
 0x1b4   :  { %v190_v56 = vpop.xlane.xlu1 %189 }
 0x1b5   :  { %v194_v58 = vmul.f32 %v190_v56, %v181_v36 }
 0x1b7   :  { %v196_v59 = vadd.f32 1e-12, %v194_v58 }
 0x1b9   :  { %444 = vrsqrt.f32 %v196_v59  ;;  %vm204_vm11 = vweird.f32 %v196_v59 }
 0x1bc   :  { %v193_v61 = vpop.xlane.xlu1 %192 }
 0x1bd   :  { %v195_v63 = vmul.f32 %v193_v61, %v181_v36 }
 0x1bf   :  { %v445_v0 = vpop.eup %444  ;;  %v197_v1 = vadd.f32 1e-12, %v195_v63 }
 0x1c0   :  { %v199_v2 = vmul.f32 %v445_v0, %v196_v59  ;;  %vm205_vm10 = vweird.f32 %v445_v0 }
 0x1c1   :  { %446 = vrsqrt.f32 %v197_v1  ;;  %vm206_vm12 = vmor %vm204_vm11, %vm205_vm10  ;;  %vm214_vm15 = vweird.f32 %v197_v1 }
 0x1c2   :  { %v200_v3 = vmul.f32 %v445_v0, %v199_v2 }
 0x1c4   :  { %v201_v4 = vmul.f32 0.5, %v200_v3 }
 0x1c6   :  { %v202_v5 = vsub.f32 1.5, %v201_v4 }
 0x1c7   :  { %v447_v6 = vpop.eup %446 }
 0x1c8   :  { %v203_v9 = vmul.f32 %v445_v0, %v202_v5  ;;  %v209_v10 = vmul.f32 %v447_v6, %v197_v1  ;;  %vm215_vm13 = vweird.f32 %v447_v6 }
 0x1c9   :  { %vm216_vm1 = vmor %vm214_vm15, %vm215_vm13 }
 0x1ca   :  { %v207_v12 = vsel %vm206_vm12, %v445_v0, %v203_v9  ;;  %v210_v14 = vmul.f32 %v447_v6, %v209_v10 }
 0x1cb   :  { %v218_v17 = vmul.f32 %v207_v12, %v184_v39 }
 0x1cc   :  { %v211_v18 = vmul.f32 0.5, %v210_v14 }
 0x1cd   :  { %v224_v8 = vmul.f32 %v435_v11, %v218_v17 }
 0x1ce   :  { %v212_v19 = vsub.f32 1.5, %v211_v18 }
 0x1cf   :  { %v230_v20 = vadd.f32 %v436_v15, %v224_v8 }
 0x1d0   :  { %v213_v21 = vmul.f32 %v447_v6, %v212_v19 }
 0x1d1   :  { %v232_v22 = vpack.c.bf16 %v230_v20, %v230_v20 }
 0x1d2   :  { %v217_v23 = vsel %vm216_vm1, %v447_v6, %v213_v21 }
 0x1d3   :  { %235 = vst.msk [vmem:[#allocation2] sm:$0xf] %vm234_vm14, %v232_v22  ;;  %v219_v24 = vmul.f32 %v217_v23, %v185_v44 }
 0x1d5   :  { %v225_v25 = vmul.f32 %v435_v11, %v219_v24 }
 0x1d7   :  { %v231_v26 = vadd.f32 %v436_v15, %v225_v25 }
 0x1d9   :  { %v233_v27 = vpack.c.bf16 %v231_v26, %v231_v26 }
 0x1db   :  { %236 = vst.msk [vmem:[#allocation2 + $0x4] sm:$0xf] %vm234_vm14, %v233_v27 }
 0x1e2   :  { %v421_v7 = vld [vmem:[#allocation2] sm:$0xff] }
 0x1e3   :  { %417 = vmatmul.msk.bf16.vlgmr.msra.gmra.mxu1 %vm57_vm0, %v421_v7 }
 0x260   :  { %v341_v29 = vpop.f32.mrf.mxu1 }
 0x261   :  { %v342_v16 = vadd.f32 %v437_v28, %v341_v29 }
 0x263   :  { %346 = vst [vmem:[#allocation3] sm:$0xff] %v342_v16 }
 0x268   :  { %v343_v30 = vpop.f32.mrf.mxu1 }
 0x269   :  { %v344_v31 = vadd.f32 %v437_v28, %v343_v30 }
 0x26b   :  { %347 = vst [vmem:[#allocation3 + $0x8] sm:$0xff] %v344_v31 }
 0x26c   :  { %360 = dma.vmem_to_hbm [thread:$0]  %s353_s26, 256, %s355_s29, [#allocation4], %s476_s30, %s476_s30, %s477_s8  }
 0x26d   :  { %472 = dma.done.wait [#allocation4], 256  }
 0x26e   :  { %473 = vsyncadd [#allocation4], 4294967040 }
 0x26f   :  { %365 = vsyncpa [#allocation4], 1 }

</bundles_post_ra>
